<compile_context>
chip_gen: v7x
topology: tpu7x:2x2x1
jax: 0.10.0
libtpu: 0.0.40
codegen_flags: <defaults>
</compile_context>

<pallas_src>
import jax
import jax.numpy as jnp
from jax import lax
from jax.experimental import pallas as pl
from jax.experimental.pallas import tpu as pltpu

EPS = 1e-5  # nn.BatchNorm2d default


# --------------------------------------------------------------------------
# shared body: zero-border pad -> im2col (written once) -> single MXU matmul
# --------------------------------------------------------------------------
def _conv3x3_im2col(src, w_ref, pre_ref, stats_ref, pad_ref, col_ref):
    """src: (1, h, w, C) f32 activation for this batch element.

    Writes pre-BN conv output to pre_ref (1, h*w, Cout) and per-block
    BatchNorm partial statistics (sum, sum-of-squares) to stats_ref (1, 2, Cout).
    """
    _, hp, wp, C = pad_ref.shape
    h, w = hp - 2, wp - 2
    hw = h * w

    # Zero only the 1-pixel border (interior is fully overwritten below).
    # Re-done every grid step because under "parallel" semantics a core may
    # never execute program_id == 0, so a "zero once" trick would be unsafe.
    zrow = jnp.zeros((1, 1, wp, C), jnp.float32)
    zcol = jnp.zeros((1, hp, 1, C), jnp.float32)
    pad_ref[:, 0:1, :, :] = zrow
    pad_ref[:, h + 1:h + 2, :, :] = zrow
    pad_ref[:, :, 0:1, :] = zcol
    pad_ref[:, :, w + 1:w + 2, :] = zcol
    pad_ref[:, 1:h + 1, 1:w + 1, :] = src

    # im2col buffer (h*w, 9*C): written once, then a single matmul with
    # K = 9*C feeds the MXU (instead of 9 matmuls with K = C).
    for t in range(9):
        dy, dx = divmod(t, 3)
        win = pad_ref[:, dy:dy + h, dx:dx + w, :]                 # (1, h, w, C)
        col_ref[:, t * C:(t + 1) * C] = win.reshape(hw, C).astype(col_ref.dtype)

    acc = jnp.dot(col_ref[...], w_ref[...],
                  preferred_element_type=jnp.float32)             # (h*w, Cout) f32

    pre_ref[...] = acc.reshape(pre_ref.shape)

    # Per-block partial BatchNorm statistics (finalized in the wrapper).
    co = acc.shape[-1]
    stats_ref[:, 0:1, :] = jnp.sum(acc, axis=0, keepdims=True).reshape(1, 1, co)
    stats_ref[:, 1:2, :] = jnp.sum(acc * acc, axis=0, keepdims=True).reshape(1, 1, co)


# --------------------------------------------------------------------------
# pass 1: maxpool(2) + conv1 (+ partial BN1 stats)
# --------------------------------------------------------------------------
def _down_stage1_kernel(x_ref, w1_ref, pre_ref, stats_ref, pad_ref, col_ref):
    _, H, W, Cin = x_ref.shape
    h, w = H // 2, W // 2
    # MaxPool2d(2) via 4 stride-2 window loads (proven lowering on this layout).
    p00 = x_ref[:, pl.ds(0, h, 2), pl.ds(0, w, 2), :]
    p01 = x_ref[:, pl.ds(0, h, 2), pl.ds(1, w, 2), :]
    p10 = x_ref[:, pl.ds(1, h, 2), pl.ds(0, w, 2), :]
    p11 = x_ref[:, pl.ds(1, h, 2), pl.ds(1, w, 2), :]
    pooled = jnp.maximum(jnp.maximum(p00, p01), jnp.maximum(p10, p11))  # (1,h,w,Cin)
    _conv3x3_im2col(pooled, w1_ref, pre_ref, stats_ref, pad_ref, col_ref)


# --------------------------------------------------------------------------
# pass 2: BN1 (folded scale/shift) + ReLU + conv2 (+ partial BN2 stats)
# --------------------------------------------------------------------------
def _down_stage2_kernel(p1_ref, sc_ref, sh_ref, w2_ref, pre_ref, stats_ref,
                        pad_ref, col_ref):
    _, hw, Cmid = p1_ref.shape
    h = pad_ref.shape[1] - 2
    w = pad_ref.shape[2] - 2
    # BN + ReLU in f32 on the VPU (scale/shift pre-folded in the wrapper).
    y1 = jnp.maximum(p1_ref[...] * sc_ref[...] + sh_ref[...], 0.0)   # (1, h*w, Cmid)
    y1 = y1.reshape(1, h, w, Cmid)
    _conv3x3_im2col(y1, w2_ref, pre_ref, stats_ref, pad_ref, col_ref)


# --------------------------------------------------------------------------
# pass 3: BN2 + ReLU on a lane-dense (h, w*Cout) slab.
# scale/shift come in as a single (1, w*Cout) row; the VPU broadcasts it over
# the sublane (h) axis for free, so no redundant HBM tiles are streamed.
# --------------------------------------------------------------------------
def _bn_relu_kernel(x_ref, sc_ref, sh_ref, o_ref):
    o_ref[...] = jnp.maximum(x_ref[...] * sc_ref[...] + sh_ref[...], 0.0)


def _fold_bn(stats, gamma, beta, count):
    """Finalize per-channel batch stats and fold BN into a scale/shift pair."""
    s = jnp.sum(stats.astype(jnp.float32), axis=0)              # (2, C)
    mean = s[0] / count
    var = jnp.maximum(s[1] / count - mean * mean, 0.0)          # biased (train-mode) var
    scale = gamma.astype(jnp.float32) * lax.rsqrt(var + EPS)
    shift = beta.astype(jnp.float32) - mean * scale
    return scale, shift


def down_forward(x_nchw, params, *, matmul_dtype=jnp.bfloat16):
    """Pallas implementation of Down(in_channels, out_channels).forward.

    x_nchw: (N, Cin, H, W) float32.  Returns (N, Cout, H//2, W//2) float32.
    """
    w1, g1, b1, w2, g2, b2 = params                 # conv weights in HWIO layout
    N, Cin, H, W = x_nchw.shape
    assert H % 2 == 0 and W % 2 == 0
    Cmid, Cout = w1.shape[-1], w2.shape[-1]
    h, w = H // 2, W // 2
    hw = h * w
    M = N * hw                                      # pixels per channel for BN stats

    x = jnp.transpose(x_nchw, (0, 2, 3, 1)).astype(jnp.float32)   # -> NHWC

    # HWIO (3,3,C,Co) -> im2col weight matrix (9*C, Co), tap-major / channel-minor,
    # cast to bf16 for the MXU (accumulation stays f32).
    w1m = w1.reshape(9 * Cin, Cmid).astype(matmul_dtype)
    w2m = w2.reshape(9 * Cmid, Cout).astype(matmul_dtype)

    cparams = pltpu.CompilerParams(
        dimension_semantics=("parallel",),          # shard batch over TCs (v7x megacore)
        vmem_limit_bytes=32 * 1024 * 1024,          # explicit budget, fits v7x's 64 MiB
    )

    # ---- pass 1: maxpool + conv1, partial BN1 stats -------------------------
    pre1, st1 = pl.pallas_call(
        _down_stage1_kernel,
        grid=(N,),
        in_specs=[
            pl.BlockSpec((1, H, W, Cin), lambda n: (n, 0, 0, 0)),
            pl.BlockSpec((9 * Cin, Cmid), lambda n: (0, 0)),
        ],
        out_specs=(
            pl.BlockSpec((1, hw, Cmid), lambda n: (n, 0, 0)),
            pl.BlockSpec((1, 2, Cmid), lambda n: (n, 0, 0)),
        ),
        out_shape=(
            jax.ShapeDtypeStruct((N, hw, Cmid), jnp.float32),
            jax.ShapeDtypeStruct((N, 2, Cmid), jnp.float32),
        ),
        scratch_shapes=[
            pltpu.VMEM((1, h + 2, w + 2, Cin), jnp.float32),   # zero-border pad buffer
            pltpu.VMEM((hw, 9 * Cin), matmul_dtype),           # im2col buffer
        ],
        compiler_params=cparams,
    )(x, w1m)

    scale1, shift1 = _fold_bn(st1, g1, b1, M)

    # ---- pass 2: BN1+ReLU + conv2, partial BN2 stats ------------------------
    pre2, st2 = pl.pallas_call(
        _down_stage2_kernel,
        grid=(N,),
        in_specs=[
            pl.BlockSpec((1, hw, Cmid), lambda n: (n, 0, 0)),
            pl.BlockSpec((1, Cmid), lambda n: (0, 0)),
            pl.BlockSpec((1, Cmid), lambda n: (0, 0)),
            pl.BlockSpec((9 * Cmid, Cout), lambda n: (0, 0)),
        ],
        out_specs=(
            pl.BlockSpec((1, hw, Cout), lambda n: (n, 0, 0)),
            pl.BlockSpec((1, 2, Cout), lambda n: (n, 0, 0)),
        ),
        out_shape=(
            jax.ShapeDtypeStruct((N, hw, Cout), jnp.float32),
            jax.ShapeDtypeStruct((N, 2, Cout), jnp.float32),
        ),
        scratch_shapes=[
            pltpu.VMEM((1, h + 2, w + 2, Cmid), jnp.float32),
            pltpu.VMEM((hw, 9 * Cmid), matmul_dtype),
        ],
        compiler_params=cparams,
    )(pre1, scale1.reshape(1, Cmid), shift1.reshape(1, Cmid), w2m)

    scale2, shift2 = _fold_bn(st2, g2, b2, M)

    # ---- pass 3: BN2 + ReLU, lane-dense layout ------------------------------
    pre2_dense = pre2.reshape(N, h, w * Cout)        # same HBM bytes, wider lane dim
    sc2_row = jnp.tile(scale2, (1, w))               # (1, w*Cout) — broadcast over h
    sh2_row = jnp.tile(shift2, (1, w))
    out_dense = pl.pallas_call(
        _bn_relu_kernel,
        grid=(N,),
        in_specs=[
            pl.BlockSpec((1, h, w * Cout), lambda n: (n, 0, 0)),
            pl.BlockSpec((1, w * Cout), lambda n: (0, 0)),
            pl.BlockSpec((1, w * Cout), lambda n: (0, 0)),
        ],
        out_specs=pl.BlockSpec((1, h, w * Cout), lambda n: (n, 0, 0)),
        out_shape=jax.ShapeDtypeStruct((N, h, w * Cout), jnp.float32),
        compiler_params=cparams,
    )(pre2_dense, sc2_row, sh2_row)

    out_nhwc = out_dense.reshape(N, h, w, Cout)
    return jnp.transpose(out_nhwc, (0, 3, 1, 2))     # -> NCHW


def _ref_forward(x_nchw, params, matmul_dtype=jnp.bfloat16):
    """Plain-JAX reference (lax.conv) with the same mixed-precision policy."""
    w1, g1, b1, w2, g2, b2 = params
    x = jnp.transpose(x_nchw, (0, 2, 3, 1)).astype(jnp.float32)
    pooled = lax.reduce_window(x, -jnp.inf, lax.max,
                               (1, 2, 2, 1), (1, 2, 2, 1), 'VALID')

    def conv_bn_relu(y, wgt, g, b):
        y = lax.conv_general_dilated(
            y.astype(matmul_dtype), wgt.astype(matmul_dtype), (1, 1), 'SAME',
            dimension_numbers=('NHWC', 'HWIO', 'NHWC'),
            preferred_element_type=jnp.float32)
        m = jnp.mean(y, axis=(0, 1, 2))
        v = jnp.mean((y - m) ** 2, axis=(0, 1, 2))
        y = (y - m) * lax.rsqrt(v + EPS) * g + b
        return jnp.maximum(y, 0.0)

    y = conv_bn_relu(pooled, w1, g1, b1)
    y = conv_bn_relu(y, w2, g2, b2)
    return jnp.transpose(y, (0, 3, 1, 2))


if __name__ == "__main__":
    # Small shapes consistent with Down(in_channels=4, out_channels=8)
    N, Cin, H, W = 2, 4, 16, 16
    Cmid = Cout = 8

    key = jax.random.PRNGKey(0)
    kx, kw1, kw2 = jax.random.split(key, 3)

    x = jax.random.normal(kx, (N, Cin, H, W), dtype=jnp.float32)

    # Deterministic synthetic parameters (HWIO conv weights, affine BN params).
    w1 = jax.random.normal(kw1, (3, 3, Cin, Cmid), dtype=jnp.float32) * 0.2
    w2 = jax.random.normal(kw2, (3, 3, Cmid, Cout), dtype=jnp.float32) * 0.2
    g1 = 1.0 + 0.1 * jnp.arange(Cmid, dtype=jnp.float32)
    b1 = 0.05 * jnp.arange(Cmid, dtype=jnp.float32) - 0.1
    g2 = 1.0 - 0.05 * jnp.arange(Cout, dtype=jnp.float32)
    b2 = 0.02 * jnp.arange(Cout, dtype=jnp.float32)
    params = (w1, g1, b1, w2, g2, b2)

    out = jax.block_until_ready(down_forward(x, params))
    ref = jax.block_until_ready(_ref_forward(x, params))

    assert out.shape == (N, Cout, H // 2, W // 2), out.shape
    max_err = float(jnp.max(jnp.abs(out - ref)))
    assert jnp.allclose(out, ref, atol=1e-2, rtol=1e-2), max_err

    # TODO(synk): BatchNorm running-mean/var bookkeeping (a training-mode side
    # effect that does not affect the forward output) is not materialized.
    print("KERNEL_OK")
</pallas_src>

<mosaic_0001>
module attributes {stable_mosaic.version = 11 : i64} {
  func.func @_down_stage1_kernel(%arg0: i32, %arg1: memref<1x16x16x4xf32, #tpu.memory_space<vmem>>, %arg2: memref<36x8xbf16, #tpu.memory_space<vmem>>, %arg3: memref<1x64x8xf32, #tpu.memory_space<vmem>>, %arg4: memref<1x2x8xf32, #tpu.memory_space<vmem>>, %arg5: memref<1x10x10x4xf32, #tpu.memory_space<vmem>>, %arg6: memref<64x36xbf16, #tpu.memory_space<vmem>>) attributes {dimension_semantics = [#tpu.dimension_semantics<parallel>], iteration_bounds = array<i64: 2>, scalar_prefetch = 0 : i64, scratch_operands = 2 : i64, tpu.core_type = #tpu.core_type<tc>, window_params = [{transform_indices = @transform_0, window_bounds = array<i64: 1, 16, 16, 4>}, {pipeline_mode = #tpu.pipeline_mode<synchronous>, transform_indices = @transform_1, window_bounds = array<i64: 36, 8>}, {transform_indices = @transform_2, window_bounds = array<i64: 1, 64, 8>}, {transform_indices = @transform_3, window_bounds = array<i64: 1, 2, 8>}]} {
    %c0 = arith.constant 0 : index
    %c0_0 = arith.constant 0 : index
    %c0_1 = arith.constant 0 : index
    %c0_2 = arith.constant 0 : index
    %0 = tpu.strided_load %arg1[%c0, %c0_0, %c0_1, %c0_2] {strides = array<i32: 1, 2, 2, 1>} : memref<1x16x16x4xf32, #tpu.memory_space<vmem>>, vector<1x8x8x4xf32>
    %c0_3 = arith.constant 0 : index
    %c0_4 = arith.constant 0 : index
    %c1 = arith.constant 1 : index
    %c0_5 = arith.constant 0 : index
    %1 = tpu.strided_load %arg1[%c0_3, %c0_4, %c1, %c0_5] {strides = array<i32: 1, 2, 2, 1>} : memref<1x16x16x4xf32, #tpu.memory_space<vmem>>, vector<1x8x8x4xf32>
    %c0_6 = arith.constant 0 : index
    %c1_7 = arith.constant 1 : index
    %c0_8 = arith.constant 0 : index
    %c0_9 = arith.constant 0 : index
    %2 = tpu.strided_load %arg1[%c0_6, %c1_7, %c0_8, %c0_9] {strides = array<i32: 1, 2, 2, 1>} : memref<1x16x16x4xf32, #tpu.memory_space<vmem>>, vector<1x8x8x4xf32>
    %c0_10 = arith.constant 0 : index
    %c1_11 = arith.constant 1 : index
    %c1_12 = arith.constant 1 : index
    %c0_13 = arith.constant 0 : index
    %3 = tpu.strided_load %arg1[%c0_10, %c1_11, %c1_12, %c0_13] {strides = array<i32: 1, 2, 2, 1>} : memref<1x16x16x4xf32, #tpu.memory_space<vmem>>, vector<1x8x8x4xf32>
    %4 = arith.maximumf %0, %1 : vector<1x8x8x4xf32>
    %5 = arith.maximumf %2, %3 : vector<1x8x8x4xf32>
    %6 = arith.maximumf %4, %5 : vector<1x8x8x4xf32>
    %cst = arith.constant 0.000000e+00 : f32
    %7 = vector.broadcast %cst : f32 to vector<1x1x10x4xf32>
    %cst_14 = arith.constant 0.000000e+00 : f32
    %8 = vector.broadcast %cst_14 : f32 to vector<1x10x1x4xf32>
    %c0_15 = arith.constant 0 : index
    %c0_16 = arith.constant 0 : index
    %c0_17 = arith.constant 0 : index
    %c0_18 = arith.constant 0 : index
    %9 = vector.load %arg5[%c0_15, %c0_16, %c0_17, %c0_18] : memref<1x10x10x4xf32, #tpu.memory_space<vmem>>, vector<1x1x10x4xf32>
    tpu.vector_store %arg5[%c0_15, %c0_16, %c0_17, %c0_18], %7 {strides = array<i32>} : memref<1x10x10x4xf32, #tpu.memory_space<vmem>>, vector<1x1x10x4xf32>,
    %c0_19 = arith.constant 0 : index
    %c9 = arith.constant 9 : index
    %c0_20 = arith.constant 0 : index
    %c0_21 = arith.constant 0 : index
    %10 = vector.load %arg5[%c0_19, %c9, %c0_20, %c0_21] : memref<1x10x10x4xf32, #tpu.memory_space<vmem>>, vector<1x1x10x4xf32>
    tpu.vector_store %arg5[%c0_19, %c9, %c0_20, %c0_21], %7 {strides = array<i32>} : memref<1x10x10x4xf32, #tpu.memory_space<vmem>>, vector<1x1x10x4xf32>,
    %c0_22 = arith.constant 0 : index
    %c0_23 = arith.constant 0 : index
    %c0_24 = arith.constant 0 : index
    %c0_25 = arith.constant 0 : index
    %11 = vector.load %arg5[%c0_22, %c0_23, %c0_24, %c0_25] : memref<1x10x10x4xf32, #tpu.memory_space<vmem>>, vector<1x10x1x4xf32>
    tpu.vector_store %arg5[%c0_22, %c0_23, %c0_24, %c0_25], %8 {strides = array<i32>} : memref<1x10x10x4xf32, #tpu.memory_space<vmem>>, vector<1x10x1x4xf32>,
    %c0_26 = arith.constant 0 : index
    %c0_27 = arith.constant 0 : index
    %c9_28 = arith.constant 9 : index
    %c0_29 = arith.constant 0 : index
    %12 = vector.load %arg5[%c0_26, %c0_27, %c9_28, %c0_29] : memref<1x10x10x4xf32, #tpu.memory_space<vmem>>, vector<1x10x1x4xf32>
    tpu.vector_store %arg5[%c0_26, %c0_27, %c9_28, %c0_29], %8 {strides = array<i32>} : memref<1x10x10x4xf32, #tpu.memory_space<vmem>>, vector<1x10x1x4xf32>,
    %c0_30 = arith.constant 0 : index
    %c1_31 = arith.constant 1 : index
    %c1_32 = arith.constant 1 : index
    %c0_33 = arith.constant 0 : index
    %13 = vector.load %arg5[%c0_30, %c1_31, %c1_32, %c0_33] : memref<1x10x10x4xf32, #tpu.memory_space<vmem>>, vector<1x8x8x4xf32>
    tpu.vector_store %arg5[%c0_30, %c1_31, %c1_32, %c0_33], %6 {strides = array<i32>} : memref<1x10x10x4xf32, #tpu.memory_space<vmem>>, vector<1x8x8x4xf32>,
    %c0_34 = arith.constant 0 : index
    %c0_35 = arith.constant 0 : index
    %c0_36 = arith.constant 0 : index
    %c0_37 = arith.constant 0 : index
    %14 = vector.load %arg5[%c0_34, %c0_35, %c0_36, %c0_37] : memref<1x10x10x4xf32, #tpu.memory_space<vmem>>, vector<1x8x8x4xf32>
    %15 = vector.shape_cast %14 : vector<1x8x8x4xf32> to vector<64x4xf32>
    %16 = arith.truncf %15 : vector<64x4xf32> to vector<64x4xbf16>
    %c0_38 = arith.constant 0 : index
    %c0_39 = arith.constant 0 : index
    %17 = vector.load %arg6[%c0_38, %c0_39] : memref<64x36xbf16, #tpu.memory_space<vmem>>, vector<64x4xbf16>
    tpu.vector_store %arg6[%c0_38, %c0_39], %16 {strides = array<i32>} : memref<64x36xbf16, #tpu.memory_space<vmem>>, vector<64x4xbf16>,
    %c0_40 = arith.constant 0 : index
    %c0_41 = arith.constant 0 : index
    %c1_42 = arith.constant 1 : index
    %c0_43 = arith.constant 0 : index
    %18 = vector.load %arg5[%c0_40, %c0_41, %c1_42, %c0_43] : memref<1x10x10x4xf32, #tpu.memory_space<vmem>>, vector<1x8x8x4xf32>
    %19 = vector.shape_cast %18 : vector<1x8x8x4xf32> to vector<64x4xf32>
    %20 = arith.truncf %19 : vector<64x4xf32> to vector<64x4xbf16>
    %c0_44 = arith.constant 0 : index
    %c4 = arith.constant 4 : index
    %21 = vector.load %arg6[%c0_44, %c4] : memref<64x36xbf16, #tpu.memory_space<vmem>>, vector<64x4xbf16>
    tpu.vector_store %arg6[%c0_44, %c4], %20 {strides = array<i32>} : memref<64x36xbf16, #tpu.memory_space<vmem>>, vector<64x4xbf16>,
    %c0_45 = arith.constant 0 : index
    %c0_46 = arith.constant 0 : index
    %c2 = arith.constant 2 : index
    %c0_47 = arith.constant 0 : index
    %22 = vector.load %arg5[%c0_45, %c0_46, %c2, %c0_47] : memref<1x10x10x4xf32, #tpu.memory_space<vmem>>, vector<1x8x8x4xf32>
    %23 = vector.shape_cast %22 : vector<1x8x8x4xf32> to vector<64x4xf32>
    %24 = arith.truncf %23 : vector<64x4xf32> to vector<64x4xbf16>
    %c0_48 = arith.constant 0 : index
    %c8 = arith.constant 8 : index
    %25 = vector.load %arg6[%c0_48, %c8] : memref<64x36xbf16, #tpu.memory_space<vmem>>, vector<64x4xbf16>
    tpu.vector_store %arg6[%c0_48, %c8], %24 {strides = array<i32>} : memref<64x36xbf16, #tpu.memory_space<vmem>>, vector<64x4xbf16>,
    %c0_49 = arith.constant 0 : index
    %c1_50 = arith.constant 1 : index
    %c0_51 = arith.constant 0 : index
    %c0_52 = arith.constant 0 : index
    %26 = vector.load %arg5[%c0_49, %c1_50, %c0_51, %c0_52] : memref<1x10x10x4xf32, #tpu.memory_space<vmem>>, vector<1x8x8x4xf32>
    %27 = vector.shape_cast %26 : vector<1x8x8x4xf32> to vector<64x4xf32>
    %28 = arith.truncf %27 : vector<64x4xf32> to vector<64x4xbf16>
    %c0_53 = arith.constant 0 : index
    %c12 = arith.constant 12 : index
    %29 = vector.load %arg6[%c0_53, %c12] : memref<64x36xbf16, #tpu.memory_space<vmem>>, vector<64x4xbf16>
    tpu.vector_store %arg6[%c0_53, %c12], %28 {strides = array<i32>} : memref<64x36xbf16, #tpu.memory_space<vmem>>, vector<64x4xbf16>,
    %c0_54 = arith.constant 0 : index
    %c1_55 = arith.constant 1 : index
    %c1_56 = arith.constant 1 : index
    %c0_57 = arith.constant 0 : index
    %30 = vector.load %arg5[%c0_54, %c1_55, %c1_56, %c0_57] : memref<1x10x10x4xf32, #tpu.memory_space<vmem>>, vector<1x8x8x4xf32>
    %31 = vector.shape_cast %30 : vector<1x8x8x4xf32> to vector<64x4xf32>
    %32 = arith.truncf %31 : vector<64x4xf32> to vector<64x4xbf16>
    %c0_58 = arith.constant 0 : index
    %c16 = arith.constant 16 : index
    %33 = vector.load %arg6[%c0_58, %c16] : memref<64x36xbf16, #tpu.memory_space<vmem>>, vector<64x4xbf16>
    tpu.vector_store %arg6[%c0_58, %c16], %32 {strides = array<i32>} : memref<64x36xbf16, #tpu.memory_space<vmem>>, vector<64x4xbf16>,
    %c0_59 = arith.constant 0 : index
    %c1_60 = arith.constant 1 : index
    %c2_61 = arith.constant 2 : index
    %c0_62 = arith.constant 0 : index
    %34 = vector.load %arg5[%c0_59, %c1_60, %c2_61, %c0_62] : memref<1x10x10x4xf32, #tpu.memory_space<vmem>>, vector<1x8x8x4xf32>
    %35 = vector.shape_cast %34 : vector<1x8x8x4xf32> to vector<64x4xf32>
    %36 = arith.truncf %35 : vector<64x4xf32> to vector<64x4xbf16>
    %c0_63 = arith.constant 0 : index
    %c20 = arith.constant 20 : index
    %37 = vector.load %arg6[%c0_63, %c20] : memref<64x36xbf16, #tpu.memory_space<vmem>>, vector<64x4xbf16>
    tpu.vector_store %arg6[%c0_63, %c20], %36 {strides = array<i32>} : memref<64x36xbf16, #tpu.memory_space<vmem>>, vector<64x4xbf16>,
    %c0_64 = arith.constant 0 : index
    %c2_65 = arith.constant 2 : index
    %c0_66 = arith.constant 0 : index
    %c0_67 = arith.constant 0 : index
    %38 = vector.load %arg5[%c0_64, %c2_65, %c0_66, %c0_67] : memref<1x10x10x4xf32, #tpu.memory_space<vmem>>, vector<1x8x8x4xf32>
    %39 = vector.shape_cast %38 : vector<1x8x8x4xf32> to vector<64x4xf32>
    %40 = arith.truncf %39 : vector<64x4xf32> to vector<64x4xbf16>
    %c0_68 = arith.constant 0 : index
    %c24 = arith.constant 24 : index
    %41 = vector.load %arg6[%c0_68, %c24] : memref<64x36xbf16, #tpu.memory_space<vmem>>, vector<64x4xbf16>
    tpu.vector_store %arg6[%c0_68, %c24], %40 {strides = array<i32>} : memref<64x36xbf16, #tpu.memory_space<vmem>>, vector<64x4xbf16>,
    %c0_69 = arith.constant 0 : index
    %c2_70 = arith.constant 2 : index
    %c1_71 = arith.constant 1 : index
    %c0_72 = arith.constant 0 : index
    %42 = vector.load %arg5[%c0_69, %c2_70, %c1_71, %c0_72] : memref<1x10x10x4xf32, #tpu.memory_space<vmem>>, vector<1x8x8x4xf32>
    %43 = vector.shape_cast %42 : vector<1x8x8x4xf32> to vector<64x4xf32>
    %44 = arith.truncf %43 : vector<64x4xf32> to vector<64x4xbf16>
    %c0_73 = arith.constant 0 : index
    %c28 = arith.constant 28 : index
    %45 = vector.load %arg6[%c0_73, %c28] : memref<64x36xbf16, #tpu.memory_space<vmem>>, vector<64x4xbf16>
    tpu.vector_store %arg6[%c0_73, %c28], %44 {strides = array<i32>} : memref<64x36xbf16, #tpu.memory_space<vmem>>, vector<64x4xbf16>,
    %c0_74 = arith.constant 0 : index
    %c2_75 = arith.constant 2 : index
    %c2_76 = arith.constant 2 : index
    %c0_77 = arith.constant 0 : index
    %46 = vector.load %arg5[%c0_74, %c2_75, %c2_76, %c0_77] : memref<1x10x10x4xf32, #tpu.memory_space<vmem>>, vector<1x8x8x4xf32>
    %47 = vector.shape_cast %46 : vector<1x8x8x4xf32> to vector<64x4xf32>
    %48 = arith.truncf %47 : vector<64x4xf32> to vector<64x4xbf16>
    %c0_78 = arith.constant 0 : index
    %c32 = arith.constant 32 : index
    %49 = vector.load %arg6[%c0_78, %c32] : memref<64x36xbf16, #tpu.memory_space<vmem>>, vector<64x4xbf16>
    tpu.vector_store %arg6[%c0_78, %c32], %48 {strides = array<i32>} : memref<64x36xbf16, #tpu.memory_space<vmem>>, vector<64x4xbf16>,
    %c0_79 = arith.constant 0 : index
    %c0_80 = arith.constant 0 : index
    %50 = vector.load %arg6[%c0_79, %c0_80] : memref<64x36xbf16, #tpu.memory_space<vmem>>, vector<64x36xbf16>
    %c0_81 = arith.constant 0 : index
    %c0_82 = arith.constant 0 : index
    %51 = vector.load %arg2[%c0_81, %c0_82] : memref<36x8xbf16, #tpu.memory_space<vmem>>, vector<36x8xbf16>
    %cst_83 = arith.constant dense<0.000000e+00> : vector<64x8xf32>
    %52 = tpu.matmul %50, %51, %cst_83 {dimension_numbers = #tpu.dot_dimension_numbers<[1], [0], [0], [1], [0, 0, 1, 1], [], []>} : vector<64x36xbf16>, vector<36x8xbf16>, vector<64x8xf32> -> vector<64x8xf32>
    %53 = vector.shape_cast %52 : vector<64x8xf32> to vector<1x64x8xf32>
    %c0_84 = arith.constant 0 : index
    %c0_85 = arith.constant 0 : index
    %c0_86 = arith.constant 0 : index
    %54 = vector.load %arg3[%c0_84, %c0_85, %c0_86] : memref<1x64x8xf32, #tpu.memory_space<vmem>>, vector<1x64x8xf32>
    tpu.vector_store %arg3[%c0_84, %c0_85, %c0_86], %53 {strides = array<i32>} : memref<1x64x8xf32, #tpu.memory_space<vmem>>, vector<1x64x8xf32>,
    %cst_87 = arith.constant dense<0.000000e+00> : vector<8xf32>
    %55 = vector.multi_reduction <add>, %52, %cst_87 [0] : vector<64x8xf32> to vector<8xf32>
    %56 = vector.shape_cast %55 : vector<8xf32> to vector<1x8xf32>
    %57 = vector.shape_cast %56 : vector<1x8xf32> to vector<1x1x8xf32>
    %c0_88 = arith.constant 0 : index
    %c0_89 = arith.constant 0 : index
    %c0_90 = arith.constant 0 : index
    %58 = vector.load %arg4[%c0_88, %c0_89, %c0_90] : memref<1x2x8xf32, #tpu.memory_space<vmem>>, vector<1x1x8xf32>
    tpu.vector_store %arg4[%c0_88, %c0_89, %c0_90], %57 {strides = array<i32>} : memref<1x2x8xf32, #tpu.memory_space<vmem>>, vector<1x1x8xf32>,
    %59 = arith.mulf %52, %52 : vector<64x8xf32>
    %cst_91 = arith.constant dense<0.000000e+00> : vector<8xf32>
    %60 = vector.multi_reduction <add>, %59, %cst_91 [0] : vector<64x8xf32> to vector<8xf32>
    %61 = vector.shape_cast %60 : vector<8xf32> to vector<1x8xf32>
    %62 = vector.shape_cast %61 : vector<1x8xf32> to vector<1x1x8xf32>
    %c0_92 = arith.constant 0 : index
    %c1_93 = arith.constant 1 : index
    %c0_94 = arith.constant 0 : index
    %63 = vector.load %arg4[%c0_92, %c1_93, %c0_94] : memref<1x2x8xf32, #tpu.memory_space<vmem>>, vector<1x1x8xf32>
    tpu.vector_store %arg4[%c0_92, %c1_93, %c0_94], %62 {strides = array<i32>} : memref<1x2x8xf32, #tpu.memory_space<vmem>>, vector<1x1x8xf32>,
    return
  }
  func.func @transform_0(%arg0: i32) -> (i32, i32, i32, i32) {
    %c0_i32 = arith.constant 0 : i32
    %c0_i32_0 = arith.constant 0 : i32
    %c0_i32_1 = arith.constant 0 : i32
    %c0_i32_2 = arith.constant 0 : i32
    return %arg0, %c0_i32, %c0_i32_0, %c0_i32_1 : i32, i32, i32, i32
  }
  func.func @transform_1(%arg0: i32) -> (i32, i32) {
    %c0_i32 = arith.constant 0 : i32
    %c0_i32_0 = arith.constant 0 : i32
    %c0_i32_1 = arith.constant 0 : i32
    return %c0_i32, %c0_i32_0 : i32, i32
  }
  func.func @transform_2(%arg0: i32) -> (i32, i32, i32) {
    %c0_i32 = arith.constant 0 : i32
    %c0_i32_0 = arith.constant 0 : i32
    %c0_i32_1 = arith.constant 0 : i32
    return %arg0, %c0_i32, %c0_i32_0 : i32, i32, i32
  }
  func.func @transform_3(%arg0: i32) -> (i32, i32, i32) {
    %c0_i32 = arith.constant 0 : i32
    %c0_i32_0 = arith.constant 0 : i32
    %c0_i32_1 = arith.constant 0 : i32
    return %arg0, %c0_i32, %c0_i32_0 : i32, i32, i32
  }
}

</mosaic_0001>

<bundles_post_ra>
// kernel: tpu_custom_call.1
= control target key start
LH: loop header
LB: loop body
LE: loop exit
PB: predicated region body
PF: predicated region fallthrough
CT: control target
= control target key end

     0   :  { %9 = vsyncpa [#allocation5], 0  ;;  %s1408_s0 = inlined_call_operand.vmem [shape: f32[2,16,16,4], index: 0, kind: input, shape index: {}]   ;;  %s1409_s1 = inlined_call_operand.vmem [shape: bf16[36,8], index: 1, kind: input, shape index: {}]   ;;  %s1410_s2 = inlined_call_operand.vmem [shape: f32[2,64,8], index: 2, kind: output, shape index: {0}]   ;;  %s1411_s3 = inlined_call_operand.hbm [shape: f32[2,2,8], index: 3, kind: output, shape index: {1}]  }
   0x1   :  { %11 = vsyncpa [#allocation5 + $0x1], 0  ;;  %s1104_s12 = smov 0   ;;  %s1106_s13 = smov 0  }
   0x2   :  { %s1108_s14 = smov 0   ;;  %s1110_s15 = smov 0  }
   0x3 LB: > { %s1125_s16 = sadd.s32 4294967295, %s1072_s15   ;;  %s877_s17 = sadd.s32 4294967294, %s1072_s15   ;;  %s1072_s15 = sphi %s1110_s15, %s1417_s15   ;;  %s1068_s14 = sphi %s1108_s14, %s1416_s14   ;;  %s1064_s13 = sphi %s1106_s13, %s1415_s13   ;;  %s1060_s12 = sphi %s1104_s12, %s1414_s12  }
   0x4   : > { %s1129_s18 = sadd.s32 1, %s1072_s15   ;;  %s97_s19 = sadd.s32 1, %s1068_s14 }
   0x5   : > { %s94_s20 = ssub.s32 %s1072_s15, %s1129_s18  ;;  %p107_p0 = scmp.ne.s32.totalorder %s1068_s14, %s1064_s13 }
   0x6   : > { %p95_p1 = scmp.eq.s32.totalorder %s94_s20, 0  ;;  %p108_p2 = scmp.eq.s32.totalorder %s1125_s16, 1 }
   0x7   : > { %p113_p3 = scmp.ne.s32.totalorder %s1064_s13, %s1060_s12  ;;  %p114_p4 = scmp.eq.s32.totalorder %s877_s17, 1 }
   0x8   : > { %s1140_s21 = scalar_select %p95_p1, %s1068_s14, %s97_s19  }
   0x9   : > { %p1142_p5 = por %p108_p2, %p107_p0  ;;  %p1146_p6 = por %p114_p4, %p113_p3 }
   0xa   : > { %p880_p7 = scmp.ge.s32.totalorder %s1072_s15, 1  ;;  %p143_p8 = scmp.lt.s32.totalorder %s1072_s15, 3 }
   0xc   : > { %p144_p9 = pnand %p880_p7, %p143_p8 }
   0xd   : > { %p172_p10 = scmp.lt.s32.totalorder (!%p144_p9), %s1125_s16, 1  ;;  %vm270_vm0 = vcmask (!%p144_p9), 31744   ;;  %vm272_vm1 = vcmask (!%p144_p9), 25600   ;;  %vm277_vm2 = vcmask (!%p144_p9), 24576   ;;  %v1074_v0 = vmov (!%p144_p9), 0.0   ;;  %s1075_s29 = smov (!%p144_p9), 4  }
   0xe   : > { %147 = sbr.rel (%p144_p9) target bundleno = 475 (0x1db), region = 28  ;;  %271 = vst.msk [vmem:[#allocation2] sm:$0xff] (!%p144_p9), %vm270_vm0, %v1074_v0  ;;  %275 = vst.msk [vmem:[#allocation2 + $0x90] sm:$0xff] (!%p144_p9), %vm270_vm0, %v1074_v0  ;;  %s1076_s30 = smov (!%p144_p9), 8   ;;  %vm625_vm3 = vcmask (!%p144_p9), 1041408   ;;  %vm351_vm4 = vcmask (!%p144_p9), 64544  }
   0xf   : > { %273 = vst.msk [vmem:[#allocation2 + $0x8] sm:$0x3] (!%p144_p9), %vm272_vm1, %v1074_v0  ;;  %276 = vst.msk [vmem:[#allocation2 + $0x98] sm:$0x3] (!%p144_p9), %vm272_vm1, %v1074_v0  ;;  %s1077_s4 = smov (!%p144_p9), 12   ;;  %s1078_s5 = smov (!%p144_p9), 16  }
  0x10   : > { %279 = vst.msk [vmem:[#allocation2 + $0x10] sm:$0x1] (!%p144_p9), %vm277_vm2, %v1074_v0  ;;  %280 = vst.msk [vmem:[#allocation2 + $0x20] sm:$0x1] (!%p144_p9), %vm277_vm2, %v1074_v0  ;;  %s1079_s8 = smov (!%p144_p9), 20   ;;  %s1080_s11 = smov (!%p144_p9), 24  }
  0x11   : > { %281 = vst.msk [vmem:[#allocation2 + $0x30] sm:$0x1] (!%p144_p9), %vm277_vm2, %v1074_v0  ;;  %282 = vst.msk [vmem:[#allocation2 + $0x40] sm:$0x1] (!%p144_p9), %vm277_vm2, %v1074_v0  ;;  %s1081_s20 = smov (!%p144_p9), 28   ;;  %vm384_vm5 = vcmask (!%p144_p9), 97344  }
  0x12   : > { %283 = vst.msk [vmem:[#allocation2 + $0x50] sm:$0x1] (!%p144_p9), %vm277_vm2, %v1074_v0  ;;  %284 = vst.msk [vmem:[#allocation2 + $0x60] sm:$0x1] (!%p144_p9), %vm277_vm2, %v1074_v0  ;;  %vm417_vm6 = vcmask (!%p144_p9), 130144   ;;  %vm450_vm7 = vcmask (!%p144_p9), 162944  }
  0x13   : > { %285 = vst.msk [vmem:[#allocation2 + $0x70] sm:$0x1] (!%p144_p9), %vm277_vm2, %v1074_v0  ;;  %286 = vst.msk [vmem:[#allocation2 + $0x80] sm:$0x1] (!%p144_p9), %vm277_vm2, %v1074_v0  ;;  %vm483_vm8 = vcmask (!%p144_p9), 195744   ;;  %vm517_vm9 = vcmask (!%p144_p9), 228544  }
  0x14   : > { %289 = vst.msk [vmem:[#allocation2 + $0x19] sm:$0x1] (!%p144_p9), %vm277_vm2, %v1074_v0  ;;  %290 = vst.msk [vmem:[#allocation2 + $0x29] sm:$0x1] (!%p144_p9), %vm277_vm2, %v1074_v0  ;;  %vm550_vm10 = vcmask (!%p144_p9), 261344   ;;  %vm583_vm11 = vcmask (!%p144_p9), 294144  }
  0x15   : > { %291 = vst.msk [vmem:[#allocation2 + $0x39] sm:$0x1] %vm277_vm2, %v1074_v0  ;;  %292 = vst.msk [vmem:[#allocation2 + $0x49] sm:$0x1] %vm277_vm2, %v1074_v0  ;;  %s1174_s24 = scalar_select %p172_p10, %s1125_s16, 1  ;;  %vm612_vm12 = vcmask 293888  }
  0x16   : > { %293 = vst.msk [vmem:[#allocation2 + $0x59] sm:$0x1] %vm277_vm2, %v1074_v0  ;;  %294 = vst.msk [vmem:[#allocation2 + $0x69] sm:$0x1] %vm277_vm2, %v1074_v0  ;;  %v323_v51 = vld [vmem:[#allocation2 + $0x1] sm:$0xff]  ;;  %vm694_vm13 = vcmask 64512  }
  0x17   : > { %295 = vst.msk [vmem:[#allocation2 + $0x79] sm:$0x1] %vm277_vm2, %v1074_v0  ;;  %296 = vst.msk [vmem:[#allocation2 + $0x89] sm:$0x1] %vm277_vm2, %v1074_v0  ;;  %s928_s25 = sshll.u32 %s1174_s24, 8  ;;  %s929_s26 = sshll.u32 %s1174_s24, 6 }
  0x18   : > { %278 = vst.msk [vmem:[#allocation2] sm:$0x1] %vm277_vm2, %v1074_v0  ;;  %288 = vst.msk [vmem:[#allocation2 + $0x9] sm:$0x1] %vm277_vm2, %v1074_v0  ;;  %s1184_s28 = scalar_lea.vmem %s1408_s0, %s928_s25  ;;  %s1082_s25 = smov 32   ;;  %vm724_vm14 = vcmask 57344  }
  0x19   : > { %297 = vst.msk [vmem:[#allocation2 + $0x99] sm:$0x1] %vm277_vm2, %v1074_v0  ;;  %287 = vst.msk [vmem:[#allocation2 + $0x90] sm:$0x1] %vm277_vm2, %v1074_v0  ;;  %v183_v1 = vld [vmem:[%s1184_s28] ss:$2 sm:$0xff] }
  0x1a   : > { %v893_v2 = vld [vmem:[%s1184_s28 + $0x1] ss:$2 sm:$0xff]  ;;  %v901_v3 = vld [vmem:[%s1184_s28 + $0x10] ss:$2 sm:$0xff]  ;;  %v909_v4 = vld [vmem:[%s1184_s28 + $0x11] ss:$2 sm:$0xff] }
  0x1b   : > { %v246_v5 = vmax.f32 %v183_v1, %v893_v2  ;;  %v886_v6 = vld [vmem:[%s1184_s28 + $0x20] ss:$2 sm:$0xff]  ;;  %v254_v8 = vmax.f32 %v901_v3, %v909_v4  ;;  %v894_v9 = vld [vmem:[%s1184_s28 + $0x21] ss:$2 sm:$0xff]  ;;  %v902_v11 = vld [vmem:[%s1184_s28 + $0x30] ss:$2 sm:$0xff] }
  0x1c   : > { %v887_v7 = vld [vmem:[%s1184_s28 + $0x40] ss:$2 sm:$0xff]  ;;  %v895_v10 = vld [vmem:[%s1184_s28 + $0x41] ss:$2 sm:$0xff]  ;;  %v903_v12 = vld [vmem:[%s1184_s28 + $0x50] ss:$2 sm:$0xff]  ;;  %v247_v13 = vmax.f32 %v886_v6, %v894_v9 }
  0x1d   : > { %v248_v14 = vmax.f32 %v887_v7, %v895_v10  ;;  %v262_v15 = vmax.f32 %v246_v5, %v254_v8  ;;  %v910_v16 = vld [vmem:[%s1184_s28 + $0x31] ss:$2 sm:$0xff]  ;;  %v888_v18 = vld [vmem:[%s1184_s28 + $0x60] ss:$2 sm:$0xff]  ;;  %v896_v21 = vld [vmem:[%s1184_s28 + $0x61] ss:$2 sm:$0xff] }
  0x1e   : > { %v911_v17 = vld [vmem:[%s1184_s28 + $0x51] ss:$2 sm:$0xff]  ;;  %v255_v19 = vmax.f32 %v902_v11, %v910_v16  ;;  %v904_v22 = vld [vmem:[%s1184_s28 + $0x70] ss:$2 sm:$0xff]  ;;  %v249_v24 = vmax.f32 %v888_v18, %v896_v21  ;;  %v889_v26 = vld [vmem:[%s1184_s28 + $0x80] ss:$2 sm:$0xff] }
  0x1f   : > { %v256_v20 = vmax.f32 %v903_v12, %v911_v17  ;;  %v912_v23 = vld [vmem:[%s1184_s28 + $0x71] ss:$2 sm:$0xff]  ;;  %299 = vst.msk [vmem:[#allocation2 + $0x11] sm:$0xff] %vm270_vm0, %v262_v15  ;;  %v897_v27 = vld [vmem:[%s1184_s28 + $0x81] ss:$2 sm:$0xff]  ;;  %s169_s24 = sand.u32 1, %s1064_s13  }
  0x20   : > { %v257_v25 = vmax.f32 %v904_v22, %v912_v23  ;;  %v905_v28 = vld [vmem:[%s1184_s28 + $0x90] ss:$2 sm:$0xff]  ;;  %v263_v29 = vmax.f32 %v247_v13, %v255_v19  ;;  %v913_v31 = vld [vmem:[%s1184_s28 + $0x91] ss:$2 sm:$0xff]  ;;  %v250_v32 = vmax.f32 %v889_v26, %v897_v27  ;;  %v890_v33 = vld [vmem:[%s1184_s28 + $0xa0] ss:$2 sm:$0xff] }
  0x21   : > { %v264_v30 = vmax.f32 %v248_v14, %v256_v20  ;;  %v891_v34 = vld [vmem:[%s1184_s28 + $0xc0] ss:$2 sm:$0xff]  ;;  %v258_v36 = vmax.f32 %v905_v28, %v913_v31  ;;  %v898_v37 = vld [vmem:[%s1184_s28 + $0xa1] ss:$2 sm:$0xff]  ;;  %v906_v39 = vld [vmem:[%s1184_s28 + $0xb0] ss:$2 sm:$0xff] }
  0x22   : > { %v265_v35 = vmax.f32 %v249_v24, %v257_v25  ;;  %v899_v38 = vld [vmem:[%s1184_s28 + $0xc1] ss:$2 sm:$0xff]  ;;  %300 = vst.msk [vmem:[#allocation2 + $0x21] sm:$0xff] %vm270_vm0, %v263_v29  ;;  %v907_v40 = vld [vmem:[%s1184_s28 + $0xd0] ss:$2 sm:$0xff]  ;;  %v251_v43 = vmax.f32 %v890_v33, %v898_v37  ;;  %s762_s10 = scalar_lea.sflag [#allocation5], %s169_s24 }
  0x23   : > { %301 = vst.msk [vmem:[#allocation2 + $0x31] sm:$0xff] %vm270_vm0, %v264_v30  ;;  %v914_v41 = vld [vmem:[%s1184_s28 + $0xb1] ss:$2 sm:$0xff]  ;;  %v252_v44 = vmax.f32 %v891_v34, %v899_v38  ;;  %v266_v45 = vmax.f32 %v250_v32, %v258_v36  ;;  %v892_v48 = vld [vmem:[%s1184_s28 + $0xe0] ss:$2 sm:$0xff] }
  0x24   : > { %v915_v42 = vld [vmem:[%s1184_s28 + $0xd1] ss:$2 sm:$0xff]  ;;  %302 = vst.msk [vmem:[#allocation2 + $0x41] sm:$0xff] %vm270_vm0, %v265_v35  ;;  %v259_v46 = vmax.f32 %v906_v39, %v914_v41  ;;  %v900_v49 = vld [vmem:[%s1184_s28 + $0xe1] ss:$2 sm:$0xff] }
  0x25   : > { %v260_v47 = vmax.f32 %v907_v40, %v915_v42  ;;  %v908_v50 = vld [vmem:[%s1184_s28 + $0xf0] ss:$2 sm:$0xff]  ;;  %v356_v52 = vld [vmem:[#allocation2 + $0x2] sm:$0xff]  ;;  %v916_v53 = vld [vmem:[%s1184_s28 + $0xf1] ss:$2 sm:$0xff]  ;;  %v253_v54 = vmax.f32 %v892_v48, %v900_v49  ;;  %303 = vst.msk [vmem:[#allocation2 + $0x51] sm:$0xff] %vm270_vm0, %v266_v45 }
  0x26   : > { %v267_v55 = vmax.f32 %v251_v43, %v259_v46  ;;  %v261_v57 = vmax.f32 %v908_v50, %v916_v53  ;;  %v307_v58 = vld [vmem:[#allocation2] sm:$0xff]  ;;  %v324_v59 = vld [vmem:[#allocation2 + $0x11] sm:$0xff]  ;;  %v1008_v27 = vld [vmem:[%s1409_s1 + $0x8] sm:$0xff]  }
  0x27   : > { %v268_v56 = vmax.f32 %v252_v44, %v260_v47  ;;  %v357_v60 = vld [vmem:[#allocation2 + $0x12] sm:$0xff]  ;;  %v331_v62 = vpack.c.bf16 %v324_v59, %v323_v51  ;;  %v1007_v25 = vld [vmem:[%s1409_s1] sm:$0xff]   ;;  %v1009_v29 = vld [vmem:[%s1409_s1 + $0x10] ss:$0 sps:$4 sm:$0x33]  }
  0x28   : > { %v389_v61 = vld [vmem:[#allocation2 + $0x10] sm:$0xff]  ;;  %v364_v63 = vpack.c.bf16 %v357_v60, %v356_v52  ;;  %304 = vst.msk [vmem:[#allocation2 + $0x61] sm:$0xff] %vm270_vm0, %v267_v55  ;;  %v269_v0 = vmax.f32 %v253_v54, %v261_v57  ;;  %937 = vmatprep.subr.bf16.mxu0 %v1007_v25  ;;  %951 = vmatprep.subr.bf16.mxu1 %v1007_v25  ;;  %v627_v30 = vsel %vm625_vm3, %v1009_v29, 0 }
  0x29   : > { %305 = vst.msk [vmem:[#allocation2 + $0x71] sm:$0xff] %vm270_vm0, %v268_v56  ;;  %v315_v1 = vpack.c.bf16 %v389_v61, %v307_v58  ;;  %339 = vrot.lane.b32.xlu0 %v331_v62, %s1075_s29  ;;  %v325_v2 = vld [vmem:[#allocation2 + $0x21] sm:$0xff]  ;;  %938 = vmatpush3.bf16.msra.mxu0 %v1007_v25  ;;  %v496_v48 = vld [vmem:[#allocation2 + $0x90] sm:$0xff] }
  0x2a   : > { %372 = vrot.lane.b32.xlu1 %v364_v63, %s1076_s30  ;;  %v326_v3 = vld [vmem:[#allocation2 + $0x31] sm:$0xff]  ;;  %v358_v4 = vld [vmem:[#allocation2 + $0x22] sm:$0xff]  ;;  %306 = vst.msk [vmem:[#allocation2 + $0x81] sm:$0xff] %vm270_vm0, %v269_v0  ;;  %v430_v20 = vpack.c.bf16 %v325_v2, %v324_v59  ;;  %954 = vmatpush3.bf16.msra.mxu1 %v1007_v25 }
  0x2b   : > { %319 = vst.msk [vmem:[#allocation3] sm:$0xff] %vm270_vm0, %v315_v1  ;;  %v332_v5 = vpack.c.bf16 %v326_v3, %v325_v2  ;;  %v359_v6 = vld [vmem:[#allocation2 + $0x32] sm:$0xff]  ;;  %v390_v7 = vld [vmem:[#allocation2 + $0x20] sm:$0xff]  ;;  %v463_v23 = vpack.c.bf16 %v358_v4, %v357_v60  ;;  %939 = vmatprep.subr.bf16.mxu0 %v1008_v27  ;;  %952 = vmatprep.subr.bf16.mxu1 %v1008_v27 }
  0x2c   : > { %v391_v8 = vld [vmem:[#allocation2 + $0x30] sm:$0xff]  ;;  %v365_v9 = vpack.c.bf16 %v359_v6, %v358_v4  ;;  %v392_v10 = vld [vmem:[#allocation2 + $0x40] sm:$0xff]  ;;  %v397_v13 = vpack.c.bf16 %v390_v7, %v389_v61 }
  0x2d   : > { %v497_v11 = vpack.c.bf16 %v391_v8, %v390_v7  ;;  %v1229_v12 = vld [vmem:[#allocation2 + $0x50] sm:$0xff]  ;;  %341 = vrot.lane.b32.xlu0 %v332_v5, %s1075_s29  ;;  %v398_v14 = vpack.c.bf16 %v392_v10, %v391_v8  ;;  %v425_v16 = vld [vmem:[#allocation2 + $0x41] sm:$0xff]  ;;  %940 = vmatpush3.bf16.msra.mxu0 %v1008_v27 }
  0x2e   : > { %374 = vrot.lane.b32.xlu1 %v365_v9, %s1076_s30  ;;  %v498_v15 = vpack.c.bf16 %v1229_v12, %v392_v10  ;;  %v431_v21 = vpack.c.bf16 %v425_v16, %v326_v3  ;;  %v458_v22 = vld [vmem:[#allocation2 + $0x42] sm:$0xff]  ;;  %v525_v26 = vld [vmem:[#allocation2 + $0x51] sm:$0xff]  ;;  %955 = vmatpush3.bf16.msra.mxu1 %v1008_v27 }
  0x2f   : > { %320 = vst.msk [vmem:[#allocation3 + $0x8] sm:$0xff] %vm270_vm0, %v497_v11  ;;  %v1235_v17 = vld [vmem:[#allocation2 + $0x60] sm:$0xff]  ;;  %v464_v24 = vpack.c.bf16 %v458_v22, %v359_v6  ;;  %v531_v28 = vpack.c.bf16 %v525_v26, %v425_v16  ;;  %957 = vmatprep.subr.msk.bf16.mxu0 %vm625_vm3, %v1009_v29  ;;  %958 = vmatprep.subr.msk.bf16.mxu1 %vm625_vm3, %v1009_v29  ;;  %v558_v31 = vld [vmem:[#allocation2 + $0x52] sm:$0xff] }
  0x30   : > { %v1237_v18 = vld [vmem:[#allocation2 + $0x70] sm:$0xff]  ;;  %321 = vst.msk [vmem:[#allocation3 + $0x10] sm:$0xff] %vm270_vm0, %v498_v15  ;;  %v329_v32 = vld [vmem:[#allocation2 + $0x61] sm:$0xff]  ;;  %v564_v34 = vpack.c.bf16 %v558_v31, %v458_v22  ;;  %v399_v40 = vpack.c.bf16 %v1235_v17, %v1229_v12 }
  0x31   : > { %v1242_v19 = vpack.c.bf16 %v1237_v18, %v1235_v17  ;;  %405 = vrot.lane.b32.xlu0 %v397_v13, %s1077_s4  ;;  %v330_v33 = vld [vmem:[#allocation2 + $0x71] sm:$0xff]  ;;  %942 = vmatpush3.bf16.msra.mxu0 %v627_v30  ;;  %v362_v36 = vld [vmem:[#allocation2 + $0x62] sm:$0xff]  ;;  %v432_v43 = vpack.c.bf16 %v329_v32, %v525_v26 }
  0x32   : > { %407 = vrot.lane.b32.xlu1 %v398_v14, %s1077_s4  ;;  %956 = vmatpush3.bf16.msra.mxu1 %v627_v30  ;;  %v334_v35 = vpack.c.bf16 %v330_v33, %v329_v32  ;;  %v363_v37 = vld [vmem:[#allocation2 + $0x72] sm:$0xff]  ;;  %v396_v39 = vld [vmem:[#allocation2 + $0x80] sm:$0xff]  ;;  %v465_v46 = vpack.c.bf16 %v362_v36, %v558_v31 }
  0x33   : > { %322 = vst.msk [vmem:[#allocation3 + $0x18] sm:$0xff] %vm270_vm0, %v1242_v19  ;;  %v367_v38 = vpack.c.bf16 %v363_v37, %v362_v36  ;;  %v400_v41 = vpack.c.bf16 %v396_v39, %v1237_v18  ;;  %v429_v42 = vld [vmem:[#allocation2 + $0x81] sm:$0xff]  ;;  %v500_v49 = vpack.c.bf16 %v496_v48, %v396_v39  ;;  %v529_v50 = vld [vmem:[#allocation2 + $0x91] sm:$0xff] }
  0x34   : > { %v433_v44 = vpack.c.bf16 %v429_v42, %v330_v33  ;;  %v462_v45 = vld [vmem:[#allocation2 + $0x82] sm:$0xff]  ;;  %v533_v51 = vpack.c.bf16 %v529_v50, %v429_v42  ;;  %v562_v52 = vld [vmem:[#allocation2 + $0x92] sm:$0xff] }
  0x35   : > { %438 = vrot.lane.b32.xlu0 %v430_v20, %s1078_s5  ;;  %v466_v47 = vpack.c.bf16 %v462_v45, %v363_v37  ;;  %v566_v53 = vpack.c.bf16 %v562_v52, %v462_v45 }
  0x36   : > { %440 = vrot.lane.b32.xlu1 %v431_v21, %s1078_s5 }
  0x39   : > { %471 = vrot.lane.b32.xlu0 %v463_v23, %s1079_s8 }
  0x3a   : > { %473 = vrot.lane.b32.xlu1 %v464_v24, %s1079_s8 }
  0x3d   : > { %505 = vrot.lane.b32.xlu0 %v497_v11, %s1080_s11 }
  0x3e   : > { %507 = vrot.lane.b32.xlu1 %v498_v15, %s1080_s11 }
  0x41   : > { %538 = vrot.lane.b32.xlu0 %v332_v5, %s1081_s20 }
  0x42   : > { %540 = vrot.lane.b32.xlu1 %v531_v28, %s1081_s20 }
  0x45   : > { %571 = vrot.lane.b32.xlu0 %v365_v9, %s1082_s25 }
  0x46   : > { %343 = vrot.lane.b32.xlu1 %v531_v28, %s1075_s29 }
  0x49   : > { %573 = vrot.lane.b32.xlu0 %v564_v34, %s1082_s25 }
  0x4a   : > { %345 = vrot.lane.b32.xlu1 %v334_v35, %s1075_s29  ;;  %s1327_s29 = scalar_lea.vmem %s1410_s2, %s929_s26 }
  0x4d   : > { %376 = vrot.lane.b32.xlu0 %v564_v34, %s1076_s30 }
  0x4e   : > { %378 = vrot.lane.b32.xlu1 %v367_v38, %s1076_s30  ;;  %s881_s30 = sshll.u32 %s169_s24, 1 }
  0x51   : > { %409 = vrot.lane.b32.xlu0 %v399_v40, %s1077_s4 }
  0x52   : > { %411 = vrot.lane.b32.xlu1 %v400_v41, %s1077_s4  ;;  %s925_s4 = sshll.u32 %s1125_s16, 5  ;;  %s1083_s16 = smov [#allocation4]  }
  0x53   : > { %s1366_s9 = scalar_lea.hbm %s1411_s3, %s925_s4  ;;  %s1014_s17 = sshll.u32 %s1083_s16, 4  ;;  %s1015_s17 = int_to_ptr.vmem [resolvable:$false] %s1014_s17 }
  0x54   : > { %s1016_s19 = scalar_lea.vmem %s1015_s17, 64 }
  0x55   : > { %442 = vrot.lane.b32.xlu0 %v432_v43, %s1078_s5 }
  0x56   : > { %444 = vrot.lane.b32.xlu1 %v433_v44, %s1078_s5  ;;  %s171_s5 = scalar_lea.vmem [#allocation4], %s881_s30 }
  0x57   : > { %s778_s6 = sshll.u32 %s171_s5, 4  ;;  %s1368_s6 = int_to_ptr.vmem [resolvable:$true] %s778_s6 }
  0x58   : > { %p1017_p0 = scmp.lt.s32.totalorder %s1368_s6, %s1015_s17 }
  0x59   : > { %475 = vrot.lane.b32.xlu0 %v465_v46, %s1079_s8 }
  0x5a   : > { %477 = vrot.lane.b32.xlu1 %v466_v47, %s1079_s8 }
  0x5d   : > { %509 = vrot.lane.b32.xlu0 %v1242_v19, %s1080_s11 }
  0x5e   : > { %511 = vrot.lane.b32.xlu1 %v500_v49, %s1080_s11  ;;  %s1010_s11 = scalar_lea.vmem %s1368_s6, 32 }
  0x5f   : > { %p1011_p11 = scmp.ne.s32.totalorder %s1368_s6, %s1010_s11  ;;  %p1018_p1 = scmp.lt.s32.totalorder %s1016_s19, %s1010_s11 }
  0x61   : > { %542 = vrot.lane.b32.xlu0 %v334_v35, %s1081_s20  ;;  %p1012_p12 = pnand %p1011_p11, %p1142_p5  ;;  %p1019_p2 = por %p1018_p1, %p1017_p0 }
  0x62   : > { %544 = vrot.lane.b32.xlu1 %v533_v51, %s1081_s20 }
  0x63   : > { %p1013_p13 = pneg %p1012_p12 }
  0x65   : > { %575 = vrot.lane.b32.xlu0 %v367_v38, %s1082_s25  ;;  %p1020_p3 = pnand %p1019_p2, %p1013_p13 }
  0x66   : > { %577 = vrot.lane.b32.xlu1 %v566_v53, %s1082_s25 }
  0x9b   : > { %v340_v54 = vpop.permute.xlu0 %339 }
  0x9c   : > { %v373_v55 = vpop.permute.xlu1 %372  ;;  %352 = vst.msk [vmem:[#allocation3] sm:$0xff] %vm351_vm4, %v340_v54 }
  0x9d   : > { %385 = vst.msk [vmem:[#allocation3] sm:$0xff] %vm384_vm5, %v373_v55 }
  0x9f   : > { %v342_v56 = vpop.permute.xlu0 %341 }
  0xa0   : > { %v375_v57 = vpop.permute.xlu1 %374  ;;  %353 = vst.msk [vmem:[#allocation3 + $0x8] sm:$0xff] %vm351_vm4, %v342_v56 }
  0xa1   : > { %386 = vst.msk [vmem:[#allocation3 + $0x8] sm:$0xff] %vm384_vm5, %v375_v57 }
  0xa3   : > { %v406_v58 = vpop.permute.xlu0 %405 }
  0xa4   : > { %v408_v59 = vpop.permute.xlu1 %407  ;;  %418 = vst.msk [vmem:[#allocation3] sm:$0xff] %vm417_vm6, %v406_v58 }
  0xa5   : > { %419 = vst.msk [vmem:[#allocation3 + $0x8] sm:$0xff] %vm417_vm6, %v408_v59 }
  0xa7   : > { %v439_v60 = vpop.permute.xlu0 %438 }
  0xa8   : > { %v441_v61 = vpop.permute.xlu1 %440  ;;  %451 = vst.msk [vmem:[#allocation3] sm:$0xff] %vm450_vm7, %v439_v60 }
  0xa9   : > { %452 = vst.msk [vmem:[#allocation3 + $0x8] sm:$0xff] %vm450_vm7, %v441_v61 }
  0xab   : > { %v472_v62 = vpop.permute.xlu0 %471 }
  0xac   : > { %v474_v63 = vpop.permute.xlu1 %473  ;;  %484 = vst.msk [vmem:[#allocation3] sm:$0xff] %vm483_vm8, %v472_v62 }
  0xad   : > { %485 = vst.msk [vmem:[#allocation3 + $0x8] sm:$0xff] %vm483_vm8, %v474_v63 }
  0xaf   : > { %v506_v0 = vpop.permute.xlu0 %505 }
  0xb0   : > { %v508_v1 = vpop.permute.xlu1 %507  ;;  %518 = vst.msk [vmem:[#allocation3] sm:$0xff] %vm517_vm9, %v506_v0 }
  0xb1   : > { %519 = vst.msk [vmem:[#allocation3 + $0x8] sm:$0xff] %vm517_vm9, %v508_v1 }
  0xb3   : > { %v539_v2 = vpop.permute.xlu0 %538 }
  0xb4   : > { %v541_v3 = vpop.permute.xlu1 %540  ;;  %551 = vst.msk [vmem:[#allocation3] sm:$0xff] %vm550_vm10, %v539_v2 }
  0xb5   : > { %552 = vst.msk [vmem:[#allocation3 + $0x8] sm:$0xff] %vm550_vm10, %v541_v3 }
  0xb7   : > { %v572_v4 = vpop.permute.xlu0 %571 }
  0xb8   : > { %v344_v5 = vpop.permute.xlu1 %343  ;;  %584 = vst.msk [vmem:[#allocation3] sm:$0xff] %vm583_vm11, %v572_v4 }
  0xb9   : > { %354 = vst.msk [vmem:[#allocation3 + $0x10] sm:$0xff] %vm351_vm4, %v344_v5 }
  0xbb   : > { %v574_v6 = vpop.permute.xlu0 %573 }
  0xbc   : > { %v346_v7 = vpop.permute.xlu1 %345  ;;  %585 = vst.msk [vmem:[#allocation3 + $0x8] sm:$0xff] %vm583_vm11, %v574_v6 }
  0xbd   : > { %355 = vst.msk [vmem:[#allocation3 + $0x18] sm:$0xff] %vm351_vm4, %v346_v7 }
  0xbf   : > { %v377_v8 = vpop.permute.xlu0 %376  ;;  %v588_v10 = vld [vmem:[#allocation3] sm:$0xff] }
  0xc0   : > { %v379_v9 = vpop.permute.xlu1 %378  ;;  %387 = vst.msk [vmem:[#allocation3 + $0x10] sm:$0xff] %vm384_vm5, %v377_v8  ;;  %943 = vmatprep.mubr.msk.bf16.mxu0 %vm612_vm12, %v588_v10 }
  0xc1   : > { %388 = vst.msk [vmem:[#allocation3 + $0x18] sm:$0xff] %vm384_vm5, %v379_v9 }
  0xc3   : > { %v410_v11 = vpop.permute.xlu0 %409  ;;  %v589_v13 = vld [vmem:[#allocation3 + $0x8] sm:$0xff] }
  0xc4   : > { %v412_v12 = vpop.permute.xlu1 %411  ;;  %420 = vst.msk [vmem:[#allocation3 + $0x10] sm:$0xff] %vm417_vm6, %v410_v11  ;;  %944 = vmatmul.mubr.msk.bf16.vlgmr.msra.gmra.mrb[0].mxu0 %vm612_vm12, %v589_v13 }
  0xc5   : > { %421 = vst.msk [vmem:[#allocation3 + $0x18] sm:$0xff] %vm417_vm6, %v412_v12 }
  0xc7   : > { %v443_v14 = vpop.permute.xlu0 %442 }
  0xc8   : > { %v445_v15 = vpop.permute.xlu1 %444  ;;  %453 = vst.msk [vmem:[#allocation3 + $0x10] sm:$0xff] %vm450_vm7, %v443_v14 }
  0xc9   : > { %454 = vst.msk [vmem:[#allocation3 + $0x18] sm:$0xff] %vm450_vm7, %v445_v15 }
  0xcb   : > { %v476_v16 = vpop.permute.xlu0 %475 }
  0xcc   : > { %v478_v17 = vpop.permute.xlu1 %477  ;;  %486 = vst.msk [vmem:[#allocation3 + $0x10] sm:$0xff] %vm483_vm8, %v476_v16 }
  0xcd   : > { %487 = vst.msk [vmem:[#allocation3 + $0x18] sm:$0xff] %vm483_vm8, %v478_v17 }
  0xcf   : > { %v510_v18 = vpop.permute.xlu0 %509 }
  0xd0   : > { %v512_v19 = vpop.permute.xlu1 %511  ;;  %520 = vst.msk [vmem:[#allocation3 + $0x10] sm:$0xff] %vm517_vm9, %v510_v18 }
  0xd1   : > { %521 = vst.msk [vmem:[#allocation3 + $0x18] sm:$0xff] %vm517_vm9, %v512_v19 }
  0xd3   : > { %v543_v20 = vpop.permute.xlu0 %542 }
  0xd4   : > { %v545_v21 = vpop.permute.xlu1 %544  ;;  %553 = vst.msk [vmem:[#allocation3 + $0x10] sm:$0xff] %vm550_vm10, %v543_v20 }
  0xd5   : > { %554 = vst.msk [vmem:[#allocation3 + $0x18] sm:$0xff] %vm550_vm10, %v545_v21 }
  0xd7   : > { %v576_v22 = vpop.permute.xlu0 %575 }
  0xd8   : > { %v578_v23 = vpop.permute.xlu1 %577  ;;  %586 = vst.msk [vmem:[#allocation3 + $0x10] sm:$0xff] %vm583_vm11, %v576_v22 }
  0xd9   : > { %587 = vst.msk [vmem:[#allocation3 + $0x18] sm:$0xff] %vm583_vm11, %v578_v23 }
  0xdf   : > { %v590_v24 = vld [vmem:[#allocation3 + $0x10] sm:$0xff] }
  0xe0   : > { %v591_v25 = vld [vmem:[#allocation3 + $0x18] sm:$0xff]  ;;  %947 = vmatprep.mubr.msk.bf16.mxu1 %vm612_vm12, %v590_v24 }
  0xe1   : > { %948 = vmatmul.mubr.msk.bf16.vlgmr.msra.gmra.mrb[0].mxu1 %vm612_vm12, %v591_v25 }
 0x197   : > { %v945_v26 = vpop.f32.mrb[0].mxu0 }
 0x198   : > { %697 = vst.msk [vmem:[%s1327_s29 + $0x10] sm:$0xff] %vm694_vm13, %v945_v26  ;;  %v663_v27 = vpop.f32.mrb[1].mxu0  ;;  %v728_v31 = vmul.f32 %v945_v26, %v945_v26  ;;  %v706_v36 = vsel %vm694_vm13, %v945_v26, 0.0 }
 0x199   : > { %695 = vst.msk [vmem:[%s1327_s29] sm:$0xff] %vm694_vm13, %v663_v27  ;;  %v726_v28 = vmul.f32 %v663_v27, %v663_v27  ;;  %v946_v29 = vpop.f32.mrb[2].mxu0  ;;  %v703_v32 = vsel %vm694_vm13, %v663_v27, 0.0 }
 0x19a   : > { %698 = vst.msk [vmem:[%s1327_s29 + $0x18] sm:$0xff] %vm694_vm13, %v946_v29  ;;  %v666_v30 = vpop.f32.mrb[3].mxu0  ;;  %v729_v38 = vmul.f32 %v946_v29, %v946_v29  ;;  %v737_v42 = vsel %vm694_vm13, %v728_v31, 0.0  ;;  %v708_v43 = vsel %vm694_vm13, %v946_v29, 0.0 }
 0x19b   : > { %696 = vst.msk [vmem:[%s1327_s29 + $0x8] sm:$0xff] %vm694_vm13, %v666_v30  ;;  %v704_v33 = vsel %vm694_vm13, %v666_v30, 0.0  ;;  %v727_v34 = vmul.f32 %v666_v30, %v666_v30  ;;  %v734_v37 = vsel %vm694_vm13, %v726_v28, 0.0 }
 0x19c   : > { %v705_v35 = vadd.f32 %v704_v33, %v703_v32  ;;  %v739_v46 = vsel %vm694_vm13, %v729_v38, 0.0 }
 0x19d   : > { %v735_v39 = vsel %vm694_vm13, %v727_v34, 0.0 }
 0x19e   : > { %v707_v40 = vadd.f32 %v706_v36, %v705_v35  ;;  %v736_v41 = vadd.f32 %v735_v39, %v734_v37 }
 0x1a0   : > { %v738_v44 = vadd.f32 %v737_v42, %v736_v41  ;;  %v709_v45 = vadd.f32 %v708_v43, %v707_v40 }
 0x1a2   : > { %v740_v47 = vadd.f32 %v739_v46, %v738_v44 }
 0x1b4   : > { %v949_v48 = vpop.f32.mrb[0].mxu1 }
 0x1b5   : > { %701 = vst.msk [vmem:[%s1327_s29 + $0x30] sm:$0xff] %vm694_vm13, %v949_v48  ;;  %v679_v49 = vpop.f32.mrb[1].mxu1  ;;  %v732_v55 = vmul.f32 %v949_v48, %v949_v48  ;;  %v714_v61 = vsel %vm694_vm13, %v949_v48, 0.0 }
 0x1b6   : > { %699 = vst.msk [vmem:[%s1327_s29 + $0x20] sm:$0xff] %vm694_vm13, %v679_v49  ;;  %v710_v50 = vsel %vm694_vm13, %v679_v49, 0.0  ;;  %v730_v51 = vmul.f32 %v679_v49, %v679_v49  ;;  %v950_v52 = vpop.f32.mrb[2].mxu1 }
 0x1b7   : > { %v711_v53 = vadd.f32 %v710_v50, %v709_v45  ;;  %702 = vst.msk [vmem:[%s1327_s29 + $0x38] sm:$0xff] %vm694_vm13, %v950_v52  ;;  %v682_v54 = vpop.f32.mrb[3].mxu1  ;;  %v733_v62 = vmul.f32 %v950_v52, %v950_v52  ;;  %v745_v2 = vsel %vm694_vm13, %v732_v55, 0.0  ;;  %v716_v3 = vsel %vm694_vm13, %v950_v52, 0.0 }
 0x1b8   : > { %v741_v56 = vsel %vm694_vm13, %v730_v51, 0.0  ;;  %700 = vst.msk [vmem:[%s1327_s29 + $0x28] sm:$0xff] %vm694_vm13, %v682_v54  ;;  %v712_v57 = vsel %vm694_vm13, %v682_v54, 0.0  ;;  %v731_v58 = vmul.f32 %v682_v54, %v682_v54 }
 0x1b9   : > { %v742_v59 = vadd.f32 %v741_v56, %v740_v47  ;;  %v713_v60 = vadd.f32 %v712_v57, %v711_v53  ;;  %v747_v6 = vsel %vm694_vm13, %v733_v62, 0.0 }
 0x1ba   : > { %v743_v63 = vsel %vm694_vm13, %v731_v58, 0.0 }
 0x1bb   : > { %v715_v0 = vadd.f32 %v714_v61, %v713_v60  ;;  %v744_v1 = vadd.f32 %v743_v63, %v742_v59 }
 0x1bd   : > { %v717_v4 = vadd.f32 %v716_v3, %v715_v0  ;;  %v746_v5 = vadd.f32 %v745_v2, %v744_v1 }
 0x1bf   : > { %v718_v7 = vrot.slane %v717_v4, 4  ;;  %v748_v8 = vadd.f32 %v747_v6, %v746_v5 }
 0x1c1   : > { %v719_v9 = vadd.f32 %v718_v7, %v717_v4  ;;  %v749_v10 = vrot.slane %v748_v8, 4 }
 0x1c3   : > { %v720_v11 = vrot.slane %v719_v9, 2  ;;  %v750_v12 = vadd.f32 %v749_v10, %v748_v8 }
 0x1c5   : > { %v721_v13 = vadd.f32 %v720_v11, %v719_v9  ;;  %v751_v14 = vrot.slane %v750_v12, 2 }
 0x1c7   : > { %v722_v15 = vrot.slane %v721_v13, 1  ;;  %v752_v16 = vadd.f32 %v751_v14, %v750_v12 }
 0x1c9   : > { %v723_v17 = vadd.f32 %v722_v15, %v721_v13  ;;  %v753_v18 = vrot.slane %v752_v16, 1 }
 0x1cb   : > { %725 = vst.msk [vmem:[%s171_s5] sm:$0x1] %vm724_vm14, %v723_v17  ;;  %v754_v19 = vadd.f32 %v753_v18, %v752_v16 }
 0x1cd   : > { %755 = vst.msk [vmem:[%s171_s5 + $0x1] sm:$0x1] %vm724_vm14, %v754_v19 }
 0x1ce   : > { %1023 = shalt.err (!%p1020_p3)
}
 0x1cf   : > { %s1024_s20 = scalar_lea.hbm %s1366_s9, 32  ;;  %s1028_s27 = scalar_lea.hbm %s1411_s3, 64 }
 0x1d0   : > { %p1025_p4 = scmp.ne.s32.totalorder %s1366_s9, %s1024_s20  ;;  %p1029_p9 = scmp.lt.u32.totalorder %s1366_s9, %s1411_s3 }
 0x1d1   : > { %p1030_p10 = scmp.lt.u32.totalorder %s1028_s27, %s1024_s20  ;;  %p1032_p12 = scmp.lt.u32.totalorder %s1024_s20, %s1366_s9 }
 0x1d2   : > { %p1026_p7 = pnand %p1025_p4, %p1142_p5 }
 0x1d3   : > { %p1031_p11 = por %p1030_p10, %p1029_p9 }
 0x1d4   : > { %p1027_p8 = pneg %p1026_p7 }
 0x1d5   : > { %p1033_p13 = por %p1032_p12, %p1031_p11 }
 0x1d7   : > { %p1034_p0 = pnand %p1033_p13, %p1027_p8 }
 0x1d9   : > { %1037 = shalt.err (!%p1034_p0)
}
 0x1da   : > { %959 = dma.vmem_to_hbm [thread:$0]  (%p1142_p5), %s1368_s6, 32, %s1366_s9, %s762_s10  }
 0x1db PF: > { %p965_p1 = scmp.ge.s32.totalorder %s1072_s15, 2  ;;  %s798_s24 = sand.u32 1, %s1060_s12  }
 0x1dc   : > { %s799_s30 = scalar_lea.sflag [#allocation5], %s798_s24 }
 0x1dd   : > { %p962_p2 = pnand %p965_p1, %p1146_p6 }
 0x1df   : > { %1055 = dma.done.wait (!%p962_p2), %s799_s30, 32  }
 0x1e0   : > { %1057 = vsyncadd (!%p962_p2), %s799_s30, 4294967264  ;;  %p14_p3 = scmp.ge.s32.totalorder %s1129_s18, 4   ;;  %s1414_s12 = smov %s1064_s13 }
 0x1e1   : > { %s1415_s13 = smov %s1068_s14  ;;  %s1416_s14 = smov %s1140_s21 }
 0x1e2   : > { %s1417_s15 = smov %s1129_s18  ;;  %16 = sbr.rel (!%p14_p3) target bundleno = 3 (0x3), region = 109 }
 0x1e9   :  { %804 = vsyncpa [#allocation5], 1 }
 0x1ea   :  { %806 = vsyncpa [#allocation5 + $0x1], 1 }

</bundles_post_ra>
